<compile_context>
chip_gen: v6e
topology: v6e:2x2x1
jax: 0.10.0
libtpu: 0.0.40
codegen_flags: <defaults>
</compile_context>

<pallas_src>
import functools

import jax
import jax.numpy as jnp
from jax.experimental import pallas as pl
from jax.experimental.pallas import tpu as pltpu

NEGATIVE_SLOPE = -4.36785


def _fused_conv_conv_leaky_kernel(x_ref, w_eff_ref, b_eff_ref, lb2_ref,
                                  lbe_ref, o_ref, *, H, W, slope):
    """One batch image per grid step.

    x_ref    : (1, Cin, H*W)    unpadded input image, spatial flattened on lanes
    w_eff_ref: (Cout, Cin)      W2 @ W1            (hoisted to wrapper)
    b_eff_ref: (Cout, 1)        W2 @ b1 + b2       (hoisted to wrapper)
    lb2_ref  : (Cout, 1)        leaky(b2)   -> outer-ring constant
    lbe_ref  : (Cout, 1)        leaky(b_eff)-> inner-ring constant
    o_ref    : (1, Cout, Hp*Wp) output image, spatial flattened on lanes
    """
    Hp, Wp = H + 4, W + 4
    cin = x_ref.shape[1]
    cout = o_ref.shape[1]

    w_eff = w_eff_ref[...]                          # (Cout, Cin)
    b_eff = b_eff_ref[...]                          # (Cout, 1)
    lb2 = lb2_ref[...]                              # (Cout, 1)
    lbe = lbe_ref[...]                              # (Cout, 1)

    x = x_ref[0]                                    # (Cin, H*W)

    # Dense interior compute on the VPU: 3 broadcast-FMAs over (Cout, H*W).
    # (K=3 / K=9 would be >95% padding on the MXU -- keep it off the MXU.)
    y = jnp.broadcast_to(b_eff, (cout, H * W))
    for k in range(cin):
        y = y + w_eff[:, k:k + 1] * x[k:k + 1, :]
    y = jnp.where(y > 0, y, y * slope)              # leaky-where
    y = y.astype(o_ref.dtype)                       # (Cout, H*W)

    # Ring-constant rows, built in-kernel from an iota column mask
    # (no mask streamed from HBM).
    col = jax.lax.broadcasted_iota(jnp.int32, (cout, Wp), 1)
    is_outer_col = (col == 0) | (col == Wp - 1)
    outer_row = jnp.broadcast_to(lb2, (cout, Wp))                   # rows 0, Hp-1
    edge_row = jnp.where(is_outer_col, outer_row,
                         jnp.broadcast_to(lbe, (cout, Wp)))         # rows 1..Hp-2
    outer_row = outer_row.astype(o_ref.dtype)
    edge_row = edge_row.astype(o_ref.dtype)

    # Row-by-row assembly of the padded output (all offsets are static):
    #   row 0 / Hp-1           : outer ring only
    #   row 1 / Hp-2           : ring constants only
    #   rows 2 .. Hp-3         : ring columns + interior slab slice
    for io in range(Hp):
        base = io * Wp
        if io == 0 or io == Hp - 1:
            o_ref[0, :, base:base + Wp] = outer_row
        else:
            o_ref[0, :, base:base + Wp] = edge_row
            if 2 <= io <= Hp - 3:
                ii = io - 2
                o_ref[0, :, base + 2:base + 2 + W] = y[:, ii * W:(ii + 1) * W]


def model_forward(x_nchw, w1, b1, w2, b2):
    """Pallas implementation of Model.forward: (N,3,H,W) -> (N,9,H+4,W+4)."""
    n, cin, h, w = x_nchw.shape
    cout = w2.shape[0]
    hp, wp = h + 4, w + 4
    l_in = h * w
    l_out = hp * wp

    # Hoisted constant folding of the two 1x1 convs (tiny, done once in XLA).
    w1m = w1.reshape(cout, cin)
    w2m = w2.reshape(cout, cout)
    b1c = b1.reshape(cout, 1)
    b2c = b2.reshape(cout, 1)
    w_eff = jnp.dot(w2m, w1m, precision=jax.lax.Precision.HIGHEST)       # (Cout, Cin)
    b_eff = jnp.dot(w2m, b1c, precision=jax.lax.Precision.HIGHEST) + b2c  # (Cout, 1)
    lb2 = jnp.where(b2c > 0, b2c, b2c * NEGATIVE_SLOPE)                  # leaky(b2)
    lbe = jnp.where(b_eff > 0, b_eff, b_eff * NEGATIVE_SLOPE)            # leaky(b_eff)

    # Contiguous (free) reshapes only -- no jnp.pad, no extra HBM pass.
    x_flat = x_nchw.reshape(n, cin, l_in)

    kernel = functools.partial(_fused_conv_conv_leaky_kernel,
                               H=h, W=w, slope=NEGATIVE_SLOPE)
    out_flat = pl.pallas_call(
        kernel,
        out_shape=jax.ShapeDtypeStruct((n, cout, l_out), x_nchw.dtype),
        grid=(n,),                                                # 1 image / step
        in_specs=[
            pl.BlockSpec((1, cin, l_in), lambda i: (i, 0, 0)),    # x image
            pl.BlockSpec((cout, cin), lambda i: (0, 0)),          # W_eff
            pl.BlockSpec((cout, 1), lambda i: (0, 0)),            # b_eff
            pl.BlockSpec((cout, 1), lambda i: (0, 0)),            # leaky(b2)
            pl.BlockSpec((cout, 1), lambda i: (0, 0)),            # leaky(b_eff)
        ],
        out_specs=pl.BlockSpec((1, cout, l_out), lambda i: (i, 0, 0)),
        compiler_params=pltpu.CompilerParams(
            dimension_semantics=("parallel",)),                   # megacore on v7x
    )(x_flat, w_eff, b_eff, lb2, lbe)

    return out_flat.reshape(n, cout, hp, wp)


def _reference_forward(x_nchw, w1, b1, w2, b2):
    """Pure-JAX reference (two explicit convs) for the correctness check."""
    def conv(x, wk, bk):
        y = jax.lax.conv_general_dilated(
            x, wk, window_strides=(1, 1), padding=((1, 1), (1, 1)),
            dimension_numbers=("NCHW", "OIHW", "NCHW"),
            precision=jax.lax.Precision.HIGHEST)
        return y + bk.reshape(1, -1, 1, 1)
    v1 = conv(x_nchw, w1.reshape(9, 3, 1, 1), b1.reshape(-1))
    v2 = conv(v1, w2.reshape(9, 9, 1, 1), b2.reshape(-1))
    return jnp.where(v2 > 0, v2, v2 * NEGATIVE_SLOPE)


if __name__ == "__main__":
    key = jax.random.PRNGKey(0)
    kx, kw1, kb1, kw2, kb2 = jax.random.split(key, 5)

    # Small shapes consistent with Conv2d(3, ...): N=2, C=3, H=W=16
    x = jax.random.normal(kx, (2, 3, 16, 16), dtype=jnp.float32)

    # Deterministic parameter init (PyTorch-like uniform bounds for 1x1 convs)
    bound1 = 1.0 / (3.0 ** 0.5)
    w1 = jax.random.uniform(kw1, (9, 3), jnp.float32, -bound1, bound1)
    b1 = jax.random.uniform(kb1, (9, 1), jnp.float32, -bound1, bound1)
    bound2 = 1.0 / (9.0 ** 0.5)
    w2 = jax.random.uniform(kw2, (9, 9), jnp.float32, -bound2, bound2)
    b2 = jax.random.uniform(kb2, (9, 1), jnp.float32, -bound2, bound2)

    out = jax.jit(model_forward)(x, w1, b1, w2, b2)
    out = jax.block_until_ready(out)

    ref = _reference_forward(x, w1, b1, w2, b2)
    assert out.shape == (2, 9, 20, 20), out.shape
    # Tolerance accounts for the W2@W1 reassociation of the fused form.
    assert jnp.allclose(out, ref, atol=1e-4, rtol=1e-4), "mismatch vs reference"

    print("KERNEL_OK")
</pallas_src>

<mosaic_0001>
module attributes {stable_mosaic.version = 11 : i64} {
  func.func @_fused_conv_conv_leaky_kernel(%arg0: i32, %arg1: memref<1x3x256xf32, #tpu.memory_space<vmem>>, %arg2: memref<9x3xf32, #tpu.memory_space<vmem>>, %arg3: memref<9x1xf32, #tpu.memory_space<vmem>>, %arg4: memref<9x1xf32, #tpu.memory_space<vmem>>, %arg5: memref<9x1xf32, #tpu.memory_space<vmem>>, %arg6: memref<1x9x400xf32, #tpu.memory_space<vmem>>) attributes {dimension_semantics = [#tpu.dimension_semantics<parallel>], iteration_bounds = array<i64: 2>, scalar_prefetch = 0 : i64, scratch_operands = 0 : i64, tpu.core_type = #tpu.core_type<tc>, window_params = [{transform_indices = @transform_0, window_bounds = array<i64: 1, 3, 256>}, {pipeline_mode = #tpu.pipeline_mode<synchronous>, transform_indices = @transform_1, window_bounds = array<i64: 9, 3>}, {pipeline_mode = #tpu.pipeline_mode<synchronous>, transform_indices = @transform_2, window_bounds = array<i64: 9, 1>}, {pipeline_mode = #tpu.pipeline_mode<synchronous>, transform_indices = @transform_3, window_bounds = array<i64: 9, 1>}, {pipeline_mode = #tpu.pipeline_mode<synchronous>, transform_indices = @transform_4, window_bounds = array<i64: 9, 1>}, {transform_indices = @transform_5, window_bounds = array<i64: 1, 9, 400>}]} {
    %c0 = arith.constant 0 : index
    %c0_0 = arith.constant 0 : index
    %0 = vector.load %arg2[%c0, %c0_0] : memref<9x3xf32, #tpu.memory_space<vmem>>, vector<9x3xf32>
    %c0_1 = arith.constant 0 : index
    %c0_2 = arith.constant 0 : index
    %1 = vector.load %arg3[%c0_1, %c0_2] : memref<9x1xf32, #tpu.memory_space<vmem>>, vector<9x1xf32>
    %c0_3 = arith.constant 0 : index
    %c0_4 = arith.constant 0 : index
    %2 = vector.load %arg4[%c0_3, %c0_4] : memref<9x1xf32, #tpu.memory_space<vmem>>, vector<9x1xf32>
    %c0_5 = arith.constant 0 : index
    %c0_6 = arith.constant 0 : index
    %3 = vector.load %arg5[%c0_5, %c0_6] : memref<9x1xf32, #tpu.memory_space<vmem>>, vector<9x1xf32>
    %c0_7 = arith.constant 0 : index
    %c0_8 = arith.constant 0 : index
    %c0_9 = arith.constant 0 : index
    %4 = vector.load %arg1[%c0_7, %c0_8, %c0_9] : memref<1x3x256xf32, #tpu.memory_space<vmem>>, vector<1x3x256xf32>
    %5 = vector.shape_cast %4 : vector<1x3x256xf32> to vector<3x256xf32>
    %6 = vector.shape_cast %1 : vector<9x1xf32> to vector<9x1xf32>
    %7 = vector.broadcast %6 : vector<9x1xf32> to vector<9x256xf32>
    %8 = vector.extract_strided_slice %0 {offsets = [0, 0], sizes = [9, 1], strides = [1, 1]} : vector<9x3xf32> to vector<9x1xf32>
    %9 = vector.extract_strided_slice %5 {offsets = [0, 0], sizes = [1, 256], strides = [1, 1]} : vector<3x256xf32> to vector<1x256xf32>
    %10 = vector.broadcast %8 : vector<9x1xf32> to vector<9x256xf32>
    %11 = vector.broadcast %9 : vector<1x256xf32> to vector<9x256xf32>
    %12 = arith.mulf %10, %11 : vector<9x256xf32>
    %13 = arith.addf %7, %12 : vector<9x256xf32>
    %14 = vector.extract_strided_slice %0 {offsets = [0, 1], sizes = [9, 1], strides = [1, 1]} : vector<9x3xf32> to vector<9x1xf32>
    %15 = vector.extract_strided_slice %5 {offsets = [1, 0], sizes = [1, 256], strides = [1, 1]} : vector<3x256xf32> to vector<1x256xf32>
    %16 = vector.broadcast %14 : vector<9x1xf32> to vector<9x256xf32>
    %17 = vector.broadcast %15 : vector<1x256xf32> to vector<9x256xf32>
    %18 = arith.mulf %16, %17 : vector<9x256xf32>
    %19 = arith.addf %13, %18 : vector<9x256xf32>
    %20 = vector.extract_strided_slice %0 {offsets = [0, 2], sizes = [9, 1], strides = [1, 1]} : vector<9x3xf32> to vector<9x1xf32>
    %21 = vector.extract_strided_slice %5 {offsets = [2, 0], sizes = [1, 256], strides = [1, 1]} : vector<3x256xf32> to vector<1x256xf32>
    %22 = vector.broadcast %20 : vector<9x1xf32> to vector<9x256xf32>
    %23 = vector.broadcast %21 : vector<1x256xf32> to vector<9x256xf32>
    %24 = arith.mulf %22, %23 : vector<9x256xf32>
    %25 = arith.addf %19, %24 : vector<9x256xf32>
    %cst = arith.constant 0.000000e+00 : f32
    %26 = vector.broadcast %cst : f32 to vector<9x256xf32>
    %27 = arith.cmpf ogt, %25, %26 : vector<9x256xf32>
    %cst_10 = arith.constant -4.367850e+00 : f32
    %28 = vector.broadcast %cst_10 : f32 to vector<9x256xf32>
    %29 = arith.mulf %25, %28 : vector<9x256xf32>
    %30 = arith.select %27, %25, %29 : vector<9x256xi1>, vector<9x256xf32>
    %31 = tpu.iota {dimensions = array<i32: 1>} : vector<9x20xi32>
    %c0_i32 = arith.constant 0 : i32
    %32 = vector.broadcast %c0_i32 : i32 to vector<9x20xi32>
    %33 = arith.cmpi eq, %31, %32 : vector<9x20xi32>
    %c19_i32 = arith.constant 19 : i32
    %34 = vector.broadcast %c19_i32 : i32 to vector<9x20xi32>
    %35 = arith.cmpi eq, %31, %34 : vector<9x20xi32>
    %36 = arith.ori %33, %35 : vector<9x20xi1>
    %37 = vector.shape_cast %2 : vector<9x1xf32> to vector<9x1xf32>
    %38 = vector.broadcast %37 : vector<9x1xf32> to vector<9x20xf32>
    %39 = vector.shape_cast %3 : vector<9x1xf32> to vector<9x1xf32>
    %40 = vector.broadcast %39 : vector<9x1xf32> to vector<9x20xf32>
    %41 = arith.select %36, %38, %40 : vector<9x20xi1>, vector<9x20xf32>
    %c0_11 = arith.constant 0 : index
    %c0_12 = arith.constant 0 : index
    %c0_13 = arith.constant 0 : index
    %42 = vector.load %arg6[%c0_11, %c0_12, %c0_13] : memref<1x9x400xf32, #tpu.memory_space<vmem>>, vector<1x9x20xf32>
    %43 = vector.shape_cast %42 : vector<1x9x20xf32> to vector<9x20xf32>
    %44 = vector.shape_cast %38 : vector<9x20xf32> to vector<1x9x20xf32>
    tpu.vector_store %arg6[%c0_11, %c0_12, %c0_13], %44 {strides = array<i32>} : memref<1x9x400xf32, #tpu.memory_space<vmem>>, vector<1x9x20xf32>,
    %c0_14 = arith.constant 0 : index
    %c0_15 = arith.constant 0 : index
    %c20 = arith.constant 20 : index
    %45 = vector.load %arg6[%c0_14, %c0_15, %c20] : memref<1x9x400xf32, #tpu.memory_space<vmem>>, vector<1x9x20xf32>
    %46 = vector.shape_cast %45 : vector<1x9x20xf32> to vector<9x20xf32>
    %47 = vector.shape_cast %41 : vector<9x20xf32> to vector<1x9x20xf32>
    tpu.vector_store %arg6[%c0_14, %c0_15, %c20], %47 {strides = array<i32>} : memref<1x9x400xf32, #tpu.memory_space<vmem>>, vector<1x9x20xf32>,
    %c0_16 = arith.constant 0 : index
    %c0_17 = arith.constant 0 : index
    %c40 = arith.constant 40 : index
    %48 = vector.load %arg6[%c0_16, %c0_17, %c40] : memref<1x9x400xf32, #tpu.memory_space<vmem>>, vector<1x9x20xf32>
    %49 = vector.shape_cast %48 : vector<1x9x20xf32> to vector<9x20xf32>
    %50 = vector.shape_cast %41 : vector<9x20xf32> to vector<1x9x20xf32>
    tpu.vector_store %arg6[%c0_16, %c0_17, %c40], %50 {strides = array<i32>} : memref<1x9x400xf32, #tpu.memory_space<vmem>>, vector<1x9x20xf32>,
    %51 = vector.extract_strided_slice %30 {offsets = [0, 0], sizes = [9, 16], strides = [1, 1]} : vector<9x256xf32> to vector<9x16xf32>
    %c0_18 = arith.constant 0 : index
    %c0_19 = arith.constant 0 : index
    %c42 = arith.constant 42 : index
    %52 = vector.load %arg6[%c0_18, %c0_19, %c42] : memref<1x9x400xf32, #tpu.memory_space<vmem>>, vector<1x9x16xf32>
    %53 = vector.shape_cast %52 : vector<1x9x16xf32> to vector<9x16xf32>
    %54 = vector.shape_cast %51 : vector<9x16xf32> to vector<1x9x16xf32>
    tpu.vector_store %arg6[%c0_18, %c0_19, %c42], %54 {strides = array<i32>} : memref<1x9x400xf32, #tpu.memory_space<vmem>>, vector<1x9x16xf32>,
    %c0_20 = arith.constant 0 : index
    %c0_21 = arith.constant 0 : index
    %c60 = arith.constant 60 : index
    %55 = vector.load %arg6[%c0_20, %c0_21, %c60] : memref<1x9x400xf32, #tpu.memory_space<vmem>>, vector<1x9x20xf32>
    %56 = vector.shape_cast %55 : vector<1x9x20xf32> to vector<9x20xf32>
    %57 = vector.shape_cast %41 : vector<9x20xf32> to vector<1x9x20xf32>
    tpu.vector_store %arg6[%c0_20, %c0_21, %c60], %57 {strides = array<i32>} : memref<1x9x400xf32, #tpu.memory_space<vmem>>, vector<1x9x20xf32>,
    %58 = vector.extract_strided_slice %30 {offsets = [0, 16], sizes = [9, 16], strides = [1, 1]} : vector<9x256xf32> to vector<9x16xf32>
    %c0_22 = arith.constant 0 : index
    %c0_23 = arith.constant 0 : index
    %c62 = arith.constant 62 : index
    %59 = vector.load %arg6[%c0_22, %c0_23, %c62] : memref<1x9x400xf32, #tpu.memory_space<vmem>>, vector<1x9x16xf32>
    %60 = vector.shape_cast %59 : vector<1x9x16xf32> to vector<9x16xf32>
    %61 = vector.shape_cast %58 : vector<9x16xf32> to vector<1x9x16xf32>
    tpu.vector_store %arg6[%c0_22, %c0_23, %c62], %61 {strides = array<i32>} : memref<1x9x400xf32, #tpu.memory_space<vmem>>, vector<1x9x16xf32>,
    %c0_24 = arith.constant 0 : index
    %c0_25 = arith.constant 0 : index
    %c80 = arith.constant 80 : index
    %62 = vector.load %arg6[%c0_24, %c0_25, %c80] : memref<1x9x400xf32, #tpu.memory_space<vmem>>, vector<1x9x20xf32>
    %63 = vector.shape_cast %62 : vector<1x9x20xf32> to vector<9x20xf32>
    %64 = vector.shape_cast %41 : vector<9x20xf32> to vector<1x9x20xf32>
    tpu.vector_store %arg6[%c0_24, %c0_25, %c80], %64 {strides = array<i32>} : memref<1x9x400xf32, #tpu.memory_space<vmem>>, vector<1x9x20xf32>,
    %65 = vector.extract_strided_slice %30 {offsets = [0, 32], sizes = [9, 16], strides = [1, 1]} : vector<9x256xf32> to vector<9x16xf32>
    %c0_26 = arith.constant 0 : index
    %c0_27 = arith.constant 0 : index
    %c82 = arith.constant 82 : index
    %66 = vector.load %arg6[%c0_26, %c0_27, %c82] : memref<1x9x400xf32, #tpu.memory_space<vmem>>, vector<1x9x16xf32>
    %67 = vector.shape_cast %66 : vector<1x9x16xf32> to vector<9x16xf32>
    %68 = vector.shape_cast %65 : vector<9x16xf32> to vector<1x9x16xf32>
    tpu.vector_store %arg6[%c0_26, %c0_27, %c82], %68 {strides = array<i32>} : memref<1x9x400xf32, #tpu.memory_space<vmem>>, vector<1x9x16xf32>,
    %c0_28 = arith.constant 0 : index
    %c0_29 = arith.constant 0 : index
    %c100 = arith.constant 100 : index
    %69 = vector.load %arg6[%c0_28, %c0_29, %c100] : memref<1x9x400xf32, #tpu.memory_space<vmem>>, vector<1x9x20xf32>
    %70 = vector.shape_cast %69 : vector<1x9x20xf32> to vector<9x20xf32>
    %71 = vector.shape_cast %41 : vector<9x20xf32> to vector<1x9x20xf32>
    tpu.vector_store %arg6[%c0_28, %c0_29, %c100], %71 {strides = array<i32>} : memref<1x9x400xf32, #tpu.memory_space<vmem>>, vector<1x9x20xf32>,
    %72 = vector.extract_strided_slice %30 {offsets = [0, 48], sizes = [9, 16], strides = [1, 1]} : vector<9x256xf32> to vector<9x16xf32>
    %c0_30 = arith.constant 0 : index
    %c0_31 = arith.constant 0 : index
    %c102 = arith.constant 102 : index
    %73 = vector.load %arg6[%c0_30, %c0_31, %c102] : memref<1x9x400xf32, #tpu.memory_space<vmem>>, vector<1x9x16xf32>
    %74 = vector.shape_cast %73 : vector<1x9x16xf32> to vector<9x16xf32>
    %75 = vector.shape_cast %72 : vector<9x16xf32> to vector<1x9x16xf32>
    tpu.vector_store %arg6[%c0_30, %c0_31, %c102], %75 {strides = array<i32>} : memref<1x9x400xf32, #tpu.memory_space<vmem>>, vector<1x9x16xf32>,
    %c0_32 = arith.constant 0 : index
    %c0_33 = arith.constant 0 : index
    %c120 = arith.constant 120 : index
    %76 = vector.load %arg6[%c0_32, %c0_33, %c120] : memref<1x9x400xf32, #tpu.memory_space<vmem>>, vector<1x9x20xf32>
    %77 = vector.shape_cast %76 : vector<1x9x20xf32> to vector<9x20xf32>
    %78 = vector.shape_cast %41 : vector<9x20xf32> to vector<1x9x20xf32>
    tpu.vector_store %arg6[%c0_32, %c0_33, %c120], %78 {strides = array<i32>} : memref<1x9x400xf32, #tpu.memory_space<vmem>>, vector<1x9x20xf32>,
    %79 = vector.extract_strided_slice %30 {offsets = [0, 64], sizes = [9, 16], strides = [1, 1]} : vector<9x256xf32> to vector<9x16xf32>
    %c0_34 = arith.constant 0 : index
    %c0_35 = arith.constant 0 : index
    %c122 = arith.constant 122 : index
    %80 = vector.load %arg6[%c0_34, %c0_35, %c122] : memref<1x9x400xf32, #tpu.memory_space<vmem>>, vector<1x9x16xf32>
    %81 = vector.shape_cast %80 : vector<1x9x16xf32> to vector<9x16xf32>
    %82 = vector.shape_cast %79 : vector<9x16xf32> to vector<1x9x16xf32>
    tpu.vector_store %arg6[%c0_34, %c0_35, %c122], %82 {strides = array<i32>} : memref<1x9x400xf32, #tpu.memory_space<vmem>>, vector<1x9x16xf32>,
    %c0_36 = arith.constant 0 : index
    %c0_37 = arith.constant 0 : index
    %c140 = arith.constant 140 : index
    %83 = vector.load %arg6[%c0_36, %c0_37, %c140] : memref<1x9x400xf32, #tpu.memory_space<vmem>>, vector<1x9x20xf32>
    %84 = vector.shape_cast %83 : vector<1x9x20xf32> to vector<9x20xf32>
    %85 = vector.shape_cast %41 : vector<9x20xf32> to vector<1x9x20xf32>
    tpu.vector_store %arg6[%c0_36, %c0_37, %c140], %85 {strides = array<i32>} : memref<1x9x400xf32, #tpu.memory_space<vmem>>, vector<1x9x20xf32>,
    %86 = vector.extract_strided_slice %30 {offsets = [0, 80], sizes = [9, 16], strides = [1, 1]} : vector<9x256xf32> to vector<9x16xf32>
    %c0_38 = arith.constant 0 : index
    %c0_39 = arith.constant 0 : index
    %c142 = arith.constant 142 : index
    %87 = vector.load %arg6[%c0_38, %c0_39, %c142] : memref<1x9x400xf32, #tpu.memory_space<vmem>>, vector<1x9x16xf32>
    %88 = vector.shape_cast %87 : vector<1x9x16xf32> to vector<9x16xf32>
    %89 = vector.shape_cast %86 : vector<9x16xf32> to vector<1x9x16xf32>
    tpu.vector_store %arg6[%c0_38, %c0_39, %c142], %89 {strides = array<i32>} : memref<1x9x400xf32, #tpu.memory_space<vmem>>, vector<1x9x16xf32>,
    %c0_40 = arith.constant 0 : index
    %c0_41 = arith.constant 0 : index
    %c160 = arith.constant 160 : index
    %90 = vector.load %arg6[%c0_40, %c0_41, %c160] : memref<1x9x400xf32, #tpu.memory_space<vmem>>, vector<1x9x20xf32>
    %91 = vector.shape_cast %90 : vector<1x9x20xf32> to vector<9x20xf32>
    %92 = vector.shape_cast %41 : vector<9x20xf32> to vector<1x9x20xf32>
    tpu.vector_store %arg6[%c0_40, %c0_41, %c160], %92 {strides = array<i32>} : memref<1x9x400xf32, #tpu.memory_space<vmem>>, vector<1x9x20xf32>,
    %93 = vector.extract_strided_slice %30 {offsets = [0, 96], sizes = [9, 16], strides = [1, 1]} : vector<9x256xf32> to vector<9x16xf32>
    %c0_42 = arith.constant 0 : index
    %c0_43 = arith.constant 0 : index
    %c162 = arith.constant 162 : index
    %94 = vector.load %arg6[%c0_42, %c0_43, %c162] : memref<1x9x400xf32, #tpu.memory_space<vmem>>, vector<1x9x16xf32>
    %95 = vector.shape_cast %94 : vector<1x9x16xf32> to vector<9x16xf32>
    %96 = vector.shape_cast %93 : vector<9x16xf32> to vector<1x9x16xf32>
    tpu.vector_store %arg6[%c0_42, %c0_43, %c162], %96 {strides = array<i32>} : memref<1x9x400xf32, #tpu.memory_space<vmem>>, vector<1x9x16xf32>,
    %c0_44 = arith.constant 0 : index
    %c0_45 = arith.constant 0 : index
    %c180 = arith.constant 180 : index
    %97 = vector.load %arg6[%c0_44, %c0_45, %c180] : memref<1x9x400xf32, #tpu.memory_space<vmem>>, vector<1x9x20xf32>
    %98 = vector.shape_cast %97 : vector<1x9x20xf32> to vector<9x20xf32>
    %99 = vector.shape_cast %41 : vector<9x20xf32> to vector<1x9x20xf32>
    tpu.vector_store %arg6[%c0_44, %c0_45, %c180], %99 {strides = array<i32>} : memref<1x9x400xf32, #tpu.memory_space<vmem>>, vector<1x9x20xf32>,
    %100 = vector.extract_strided_slice %30 {offsets = [0, 112], sizes = [9, 16], strides = [1, 1]} : vector<9x256xf32> to vector<9x16xf32>
    %c0_46 = arith.constant 0 : index
    %c0_47 = arith.constant 0 : index
    %c182 = arith.constant 182 : index
    %101 = vector.load %arg6[%c0_46, %c0_47, %c182] : memref<1x9x400xf32, #tpu.memory_space<vmem>>, vector<1x9x16xf32>
    %102 = vector.shape_cast %101 : vector<1x9x16xf32> to vector<9x16xf32>
    %103 = vector.shape_cast %100 : vector<9x16xf32> to vector<1x9x16xf32>
    tpu.vector_store %arg6[%c0_46, %c0_47, %c182], %103 {strides = array<i32>} : memref<1x9x400xf32, #tpu.memory_space<vmem>>, vector<1x9x16xf32>,
    %c0_48 = arith.constant 0 : index
    %c0_49 = arith.constant 0 : index
    %c200 = arith.constant 200 : index
    %104 = vector.load %arg6[%c0_48, %c0_49, %c200] : memref<1x9x400xf32, #tpu.memory_space<vmem>>, vector<1x9x20xf32>
    %105 = vector.shape_cast %104 : vector<1x9x20xf32> to vector<9x20xf32>
    %106 = vector.shape_cast %41 : vector<9x20xf32> to vector<1x9x20xf32>
    tpu.vector_store %arg6[%c0_48, %c0_49, %c200], %106 {strides = array<i32>} : memref<1x9x400xf32, #tpu.memory_space<vmem>>, vector<1x9x20xf32>,
    %107 = vector.extract_strided_slice %30 {offsets = [0, 128], sizes = [9, 16], strides = [1, 1]} : vector<9x256xf32> to vector<9x16xf32>
    %c0_50 = arith.constant 0 : index
    %c0_51 = arith.constant 0 : index
    %c202 = arith.constant 202 : index
    %108 = vector.load %arg6[%c0_50, %c0_51, %c202] : memref<1x9x400xf32, #tpu.memory_space<vmem>>, vector<1x9x16xf32>
    %109 = vector.shape_cast %108 : vector<1x9x16xf32> to vector<9x16xf32>
    %110 = vector.shape_cast %107 : vector<9x16xf32> to vector<1x9x16xf32>
    tpu.vector_store %arg6[%c0_50, %c0_51, %c202], %110 {strides = array<i32>} : memref<1x9x400xf32, #tpu.memory_space<vmem>>, vector<1x9x16xf32>,
    %c0_52 = arith.constant 0 : index
    %c0_53 = arith.constant 0 : index
    %c220 = arith.constant 220 : index
    %111 = vector.load %arg6[%c0_52, %c0_53, %c220] : memref<1x9x400xf32, #tpu.memory_space<vmem>>, vector<1x9x20xf32>
    %112 = vector.shape_cast %111 : vector<1x9x20xf32> to vector<9x20xf32>
    %113 = vector.shape_cast %41 : vector<9x20xf32> to vector<1x9x20xf32>
    tpu.vector_store %arg6[%c0_52, %c0_53, %c220], %113 {strides = array<i32>} : memref<1x9x400xf32, #tpu.memory_space<vmem>>, vector<1x9x20xf32>,
    %114 = vector.extract_strided_slice %30 {offsets = [0, 144], sizes = [9, 16], strides = [1, 1]} : vector<9x256xf32> to vector<9x16xf32>
    %c0_54 = arith.constant 0 : index
    %c0_55 = arith.constant 0 : index
    %c222 = arith.constant 222 : index
    %115 = vector.load %arg6[%c0_54, %c0_55, %c222] : memref<1x9x400xf32, #tpu.memory_space<vmem>>, vector<1x9x16xf32>
    %116 = vector.shape_cast %115 : vector<1x9x16xf32> to vector<9x16xf32>
    %117 = vector.shape_cast %114 : vector<9x16xf32> to vector<1x9x16xf32>
    tpu.vector_store %arg6[%c0_54, %c0_55, %c222], %117 {strides = array<i32>} : memref<1x9x400xf32, #tpu.memory_space<vmem>>, vector<1x9x16xf32>,
    %c0_56 = arith.constant 0 : index
    %c0_57 = arith.constant 0 : index
    %c240 = arith.constant 240 : index
    %118 = vector.load %arg6[%c0_56, %c0_57, %c240] : memref<1x9x400xf32, #tpu.memory_space<vmem>>, vector<1x9x20xf32>
    %119 = vector.shape_cast %118 : vector<1x9x20xf32> to vector<9x20xf32>
    %120 = vector.shape_cast %41 : vector<9x20xf32> to vector<1x9x20xf32>
    tpu.vector_store %arg6[%c0_56, %c0_57, %c240], %120 {strides = array<i32>} : memref<1x9x400xf32, #tpu.memory_space<vmem>>, vector<1x9x20xf32>,
    %121 = vector.extract_strided_slice %30 {offsets = [0, 160], sizes = [9, 16], strides = [1, 1]} : vector<9x256xf32> to vector<9x16xf32>
    %c0_58 = arith.constant 0 : index
    %c0_59 = arith.constant 0 : index
    %c242 = arith.constant 242 : index
    %122 = vector.load %arg6[%c0_58, %c0_59, %c242] : memref<1x9x400xf32, #tpu.memory_space<vmem>>, vector<1x9x16xf32>
    %123 = vector.shape_cast %122 : vector<1x9x16xf32> to vector<9x16xf32>
    %124 = vector.shape_cast %121 : vector<9x16xf32> to vector<1x9x16xf32>
    tpu.vector_store %arg6[%c0_58, %c0_59, %c242], %124 {strides = array<i32>} : memref<1x9x400xf32, #tpu.memory_space<vmem>>, vector<1x9x16xf32>,
    %c0_60 = arith.constant 0 : index
    %c0_61 = arith.constant 0 : index
    %c260 = arith.constant 260 : index
    %125 = vector.load %arg6[%c0_60, %c0_61, %c260] : memref<1x9x400xf32, #tpu.memory_space<vmem>>, vector<1x9x20xf32>
    %126 = vector.shape_cast %125 : vector<1x9x20xf32> to vector<9x20xf32>
    %127 = vector.shape_cast %41 : vector<9x20xf32> to vector<1x9x20xf32>
    tpu.vector_store %arg6[%c0_60, %c0_61, %c260], %127 {strides = array<i32>} : memref<1x9x400xf32, #tpu.memory_space<vmem>>, vector<1x9x20xf32>,
    %128 = vector.extract_strided_slice %30 {offsets = [0, 176], sizes = [9, 16], strides = [1, 1]} : vector<9x256xf32> to vector<9x16xf32>
    %c0_62 = arith.constant 0 : index
    %c0_63 = arith.constant 0 : index
    %c262 = arith.constant 262 : index
    %129 = vector.load %arg6[%c0_62, %c0_63, %c262] : memref<1x9x400xf32, #tpu.memory_space<vmem>>, vector<1x9x16xf32>
    %130 = vector.shape_cast %129 : vector<1x9x16xf32> to vector<9x16xf32>
    %131 = vector.shape_cast %128 : vector<9x16xf32> to vector<1x9x16xf32>
    tpu.vector_store %arg6[%c0_62, %c0_63, %c262], %131 {strides = array<i32>} : memref<1x9x400xf32, #tpu.memory_space<vmem>>, vector<1x9x16xf32>,
    %c0_64 = arith.constant 0 : index
    %c0_65 = arith.constant 0 : index
    %c280 = arith.constant 280 : index
    %132 = vector.load %arg6[%c0_64, %c0_65, %c280] : memref<1x9x400xf32, #tpu.memory_space<vmem>>, vector<1x9x20xf32>
    %133 = vector.shape_cast %132 : vector<1x9x20xf32> to vector<9x20xf32>
    %134 = vector.shape_cast %41 : vector<9x20xf32> to vector<1x9x20xf32>
    tpu.vector_store %arg6[%c0_64, %c0_65, %c280], %134 {strides = array<i32>} : memref<1x9x400xf32, #tpu.memory_space<vmem>>, vector<1x9x20xf32>,
    %135 = vector.extract_strided_slice %30 {offsets = [0, 192], sizes = [9, 16], strides = [1, 1]} : vector<9x256xf32> to vector<9x16xf32>
    %c0_66 = arith.constant 0 : index
    %c0_67 = arith.constant 0 : index
    %c282 = arith.constant 282 : index
    %136 = vector.load %arg6[%c0_66, %c0_67, %c282] : memref<1x9x400xf32, #tpu.memory_space<vmem>>, vector<1x9x16xf32>
    %137 = vector.shape_cast %136 : vector<1x9x16xf32> to vector<9x16xf32>
    %138 = vector.shape_cast %135 : vector<9x16xf32> to vector<1x9x16xf32>
    tpu.vector_store %arg6[%c0_66, %c0_67, %c282], %138 {strides = array<i32>} : memref<1x9x400xf32, #tpu.memory_space<vmem>>, vector<1x9x16xf32>,
    %c0_68 = arith.constant 0 : index
    %c0_69 = arith.constant 0 : index
    %c300 = arith.constant 300 : index
    %139 = vector.load %arg6[%c0_68, %c0_69, %c300] : memref<1x9x400xf32, #tpu.memory_space<vmem>>, vector<1x9x20xf32>
    %140 = vector.shape_cast %139 : vector<1x9x20xf32> to vector<9x20xf32>
    %141 = vector.shape_cast %41 : vector<9x20xf32> to vector<1x9x20xf32>
    tpu.vector_store %arg6[%c0_68, %c0_69, %c300], %141 {strides = array<i32>} : memref<1x9x400xf32, #tpu.memory_space<vmem>>, vector<1x9x20xf32>,
    %142 = vector.extract_strided_slice %30 {offsets = [0, 208], sizes = [9, 16], strides = [1, 1]} : vector<9x256xf32> to vector<9x16xf32>
    %c0_70 = arith.constant 0 : index
    %c0_71 = arith.constant 0 : index
    %c302 = arith.constant 302 : index
    %143 = vector.load %arg6[%c0_70, %c0_71, %c302] : memref<1x9x400xf32, #tpu.memory_space<vmem>>, vector<1x9x16xf32>
    %144 = vector.shape_cast %143 : vector<1x9x16xf32> to vector<9x16xf32>
    %145 = vector.shape_cast %142 : vector<9x16xf32> to vector<1x9x16xf32>
    tpu.vector_store %arg6[%c0_70, %c0_71, %c302], %145 {strides = array<i32>} : memref<1x9x400xf32, #tpu.memory_space<vmem>>, vector<1x9x16xf32>,
    %c0_72 = arith.constant 0 : index
    %c0_73 = arith.constant 0 : index
    %c320 = arith.constant 320 : index
    %146 = vector.load %arg6[%c0_72, %c0_73, %c320] : memref<1x9x400xf32, #tpu.memory_space<vmem>>, vector<1x9x20xf32>
    %147 = vector.shape_cast %146 : vector<1x9x20xf32> to vector<9x20xf32>
    %148 = vector.shape_cast %41 : vector<9x20xf32> to vector<1x9x20xf32>
    tpu.vector_store %arg6[%c0_72, %c0_73, %c320], %148 {strides = array<i32>} : memref<1x9x400xf32, #tpu.memory_space<vmem>>, vector<1x9x20xf32>,
    %149 = vector.extract_strided_slice %30 {offsets = [0, 224], sizes = [9, 16], strides = [1, 1]} : vector<9x256xf32> to vector<9x16xf32>
    %c0_74 = arith.constant 0 : index
    %c0_75 = arith.constant 0 : index
    %c322 = arith.constant 322 : index
    %150 = vector.load %arg6[%c0_74, %c0_75, %c322] : memref<1x9x400xf32, #tpu.memory_space<vmem>>, vector<1x9x16xf32>
    %151 = vector.shape_cast %150 : vector<1x9x16xf32> to vector<9x16xf32>
    %152 = vector.shape_cast %149 : vector<9x16xf32> to vector<1x9x16xf32>
    tpu.vector_store %arg6[%c0_74, %c0_75, %c322], %152 {strides = array<i32>} : memref<1x9x400xf32, #tpu.memory_space<vmem>>, vector<1x9x16xf32>,
    %c0_76 = arith.constant 0 : index
    %c0_77 = arith.constant 0 : index
    %c340 = arith.constant 340 : index
    %153 = vector.load %arg6[%c0_76, %c0_77, %c340] : memref<1x9x400xf32, #tpu.memory_space<vmem>>, vector<1x9x20xf32>
    %154 = vector.shape_cast %153 : vector<1x9x20xf32> to vector<9x20xf32>
    %155 = vector.shape_cast %41 : vector<9x20xf32> to vector<1x9x20xf32>
    tpu.vector_store %arg6[%c0_76, %c0_77, %c340], %155 {strides = array<i32>} : memref<1x9x400xf32, #tpu.memory_space<vmem>>, vector<1x9x20xf32>,
    %156 = vector.extract_strided_slice %30 {offsets = [0, 240], sizes = [9, 16], strides = [1, 1]} : vector<9x256xf32> to vector<9x16xf32>
    %c0_78 = arith.constant 0 : index
    %c0_79 = arith.constant 0 : index
    %c342 = arith.constant 342 : index
    %157 = vector.load %arg6[%c0_78, %c0_79, %c342] : memref<1x9x400xf32, #tpu.memory_space<vmem>>, vector<1x9x16xf32>
    %158 = vector.shape_cast %157 : vector<1x9x16xf32> to vector<9x16xf32>
    %159 = vector.shape_cast %156 : vector<9x16xf32> to vector<1x9x16xf32>
    tpu.vector_store %arg6[%c0_78, %c0_79, %c342], %159 {strides = array<i32>} : memref<1x9x400xf32, #tpu.memory_space<vmem>>, vector<1x9x16xf32>,
    %c0_80 = arith.constant 0 : index
    %c0_81 = arith.constant 0 : index
    %c360 = arith.constant 360 : index
    %160 = vector.load %arg6[%c0_80, %c0_81, %c360] : memref<1x9x400xf32, #tpu.memory_space<vmem>>, vector<1x9x20xf32>
    %161 = vector.shape_cast %160 : vector<1x9x20xf32> to vector<9x20xf32>
    %162 = vector.shape_cast %41 : vector<9x20xf32> to vector<1x9x20xf32>
    tpu.vector_store %arg6[%c0_80, %c0_81, %c360], %162 {strides = array<i32>} : memref<1x9x400xf32, #tpu.memory_space<vmem>>, vector<1x9x20xf32>,
    %c0_82 = arith.constant 0 : index
    %c0_83 = arith.constant 0 : index
    %c380 = arith.constant 380 : index
    %163 = vector.load %arg6[%c0_82, %c0_83, %c380] : memref<1x9x400xf32, #tpu.memory_space<vmem>>, vector<1x9x20xf32>
    %164 = vector.shape_cast %163 : vector<1x9x20xf32> to vector<9x20xf32>
    %165 = vector.shape_cast %38 : vector<9x20xf32> to vector<1x9x20xf32>
    tpu.vector_store %arg6[%c0_82, %c0_83, %c380], %165 {strides = array<i32>} : memref<1x9x400xf32, #tpu.memory_space<vmem>>, vector<1x9x20xf32>,
    return
  }
  func.func @transform_0(%arg0: i32) -> (i32, i32, i32) {
    %c0_i32 = arith.constant 0 : i32
    %c0_i32_0 = arith.constant 0 : i32
    %c0_i32_1 = arith.constant 0 : i32
    return %arg0, %c0_i32, %c0_i32_0 : i32, i32, i32
  }
  func.func @transform_1(%arg0: i32) -> (i32, i32) {
    %c0_i32 = arith.constant 0 : i32
    %c0_i32_0 = arith.constant 0 : i32
    %c0_i32_1 = arith.constant 0 : i32
    return %c0_i32, %c0_i32_0 : i32, i32
  }
  func.func @transform_2(%arg0: i32) -> (i32, i32) {
    %c0_i32 = arith.constant 0 : i32
    %c0_i32_0 = arith.constant 0 : i32
    %c0_i32_1 = arith.constant 0 : i32
    return %c0_i32, %c0_i32_0 : i32, i32
  }
  func.func @transform_3(%arg0: i32) -> (i32, i32) {
    %c0_i32 = arith.constant 0 : i32
    %c0_i32_0 = arith.constant 0 : i32
    %c0_i32_1 = arith.constant 0 : i32
    return %c0_i32, %c0_i32_0 : i32, i32
  }
  func.func @transform_4(%arg0: i32) -> (i32, i32) {
    %c0_i32 = arith.constant 0 : i32
    %c0_i32_0 = arith.constant 0 : i32
    %c0_i32_1 = arith.constant 0 : i32
    return %c0_i32, %c0_i32_0 : i32, i32
  }
  func.func @transform_5(%arg0: i32) -> (i32, i32, i32) {
    %c0_i32 = arith.constant 0 : i32
    %c0_i32_0 = arith.constant 0 : i32
    %c0_i32_1 = arith.constant 0 : i32
    return %arg0, %c0_i32, %c0_i32_0 : i32, i32, i32
  }
}

</mosaic_0001>

<bundles_post_ra>
// kernel: model_forward.1
= control target key start
LH: loop header
LB: loop body
LE: loop exit
PB: predicated region body
PF: predicated region fallthrough
CT: control target
= control target key end

     0   :  { %s957_s18 = smov 0   ;;  %s1247_s0 = inlined_call_operand.vmem [shape: f32[2,3,256], index: 0, kind: input, shape index: {}]   ;;  %s1248_s1 = inlined_call_operand.vmem [shape: f32[9,3], index: 1, kind: input, shape index: {}]   ;;  %s1249_s2 = inlined_call_operand.vmem [shape: f32[9,1], index: 2, kind: input, shape index: {}]   ;;  %s1250_s3 = inlined_call_operand.vmem [shape: f32[9,1], index: 3, kind: input, shape index: {}]   ;;  %s1251_s4 = inlined_call_operand.vmem [shape: f32[9,1], index: 4, kind: input, shape index: {}]   ;;  %s1252_s5 = inlined_call_operand.vmem [shape: f32[2,9,400], index: 5, kind: output, shape index: {}]  }
   0x1 LB: > { %s817_s19 = sadd.s32 4294967295, %s888_s18   ;;  %p821_p0 = scmp.ge.s32.totalorder %s888_s18, 1  ;;  %s888_s18 = sphi %s957_s18, %s15_s18  }
   0x2   : > { %p187_p1 = scmp.lt.s32.totalorder %s888_s18, 3 }
   0x4   : > { %p188_p2 = pnand %p821_p0, %p187_p1 }
   0x5   : > { %p215_p3 = scmp.lt.s32.totalorder (!%p188_p2), %s817_s19, 1  ;;  %s894_s21 = smov (!%p188_p2), 40  }
   0x6   : > { %191 = sbr.rel (%p188_p2) target bundleno = 414 (0x19e), region = 40  ;;  %s895_s22 = smov (!%p188_p2), 60  }
   0x7   : > { %s896_s23 = smov (!%p188_p2), 80   ;;  %s897_s24 = smov (!%p188_p2), 100  }
   0x8   : > { %s898_s25 = smov (!%p188_p2), 120   ;;  %s899_s26 = smov (!%p188_p2), 12  }
   0x9   : > { %s900_s27 = smov (!%p188_p2), 32   ;;  %s901_s28 = smov (!%p188_p2), 52  }
   0xa   : > { %s902_s29 = smov (!%p188_p2), 112   ;;  %s903_s30 = smov (!%p188_p2), 4  }
   0xb   : > { %v225_v0 = vld [vmem:[%s1248_s1] sm:$0xff]  ;;  %v890_v1 = vmov 1   ;;  %v891_v2 = vmov 0   ;;  %v226_v3 = vld [vmem:[%s1248_s1 + $0x8] sm:$0x1]  ;;  %v892_v4 = vmov 2   ;;  %v255_v11 = vlaneseq }
   0xc   : > { %876 = vset.pattern.permute.xlu0 %v890_v1  ;;  %875 = vset.pattern.permute.xlu1 %v891_v2  ;;  %v227_v5 = vld [vmem:[%s1249_s2] sm:$0xff]  ;;  %v228_v6 = vld [vmem:[%s1249_s2 + $0x8] sm:$0x1]  ;;  %s1256_s19 = smov (!%p215_p3, %s817_s19), 1  ;;  %vm388_vm2 = vcmask 162816   ;;  %vm756_vm3 = vcmask 130048  }
   0xd   : > { %282 = vperm.xlu0 %876, %v225_v0   ;;  %246 = vperm.xlu1 %875, %v225_v0   ;;  %v231_v7 = vld [vmem:[%s1251_s4] sm:$0xff]  ;;  %v230_v9 = vld [vmem:[%s1250_s3 + $0x8] sm:$0x1]  ;;  %s828_s11 = sshll.u32 %s1256_s19, 3  ;;  %v256_v12 = vshrl.u32 %v255_v11, 7  ;;  %v362_v40 = vand.u32 127, %v255_v11 }
   0xe   : > { %v229_v8 = vld [vmem:[%s1250_s3] sm:$0xff]  ;;  %v232_v10 = vld [vmem:[%s1251_s4 + $0x8] sm:$0x1]  ;;  %s219_s14 = scalar_lea.vmem %s1247_s0, %s828_s11  ;;  %s829_s15 = sshll.u32 %s1256_s19, 6  ;;  %vm390_vm5 = vcmask 155648   ;;  %vm760_vm6 = vcmask 122880  }
   0xf   : > { %v257_v13 = vsub.s32 0, %v256_v12  ;;  %v261_v14 = vsub.s32 4, %v256_v12  ;;  %v291_v15 = vsub.s32 1, %v256_v12  ;;  %v295_v16 = vsub.s32 5, %v256_v12  ;;  %v233_v17 = vld [vmem:[%s219_s14] sm:$0x77]  ;;  %s1011_s20 = scalar_lea.vmem %s1252_s5, %s829_s15 }
  0x10   : > { %v329_v24 = vsub.s32 6, %v256_v12  ;;  %v325_v26 = vsub.s32 2, %v256_v12  ;;  %vm363_vm0 = vcmp.eq.s32.totalorder %v362_v40, 0  ;;  %vm364_vm1 = vcmp.eq.s32.totalorder %v362_v40, 19  ;;  %s893_s19 = smov 20   ;;  %s904_s6 = smov 24  }
  0x11   : > { %879 = vset.pattern.permute.xlu0 %v892_v4  ;;  %251 = vperm.xlu1 %875, %v226_v3   ;;  %v258_v20 = vrot.slane %v233_v17, %v257_v13  ;;  %v262_v21 = vrot.slane %v233_v17, %v261_v14  ;;  %v292_v22 = vrot.slane %v233_v17, %v291_v15  ;;  %vm1015_vm4 = vmor %vm363_vm0, %vm364_vm1  ;;  %s905_s7 = smov 44   ;;  %s906_s8 = smov 72   ;;  %vm400_vm11 = vcmask 326816  }
  0x12   : > { %320 = vperm.xlu0 %879, %v226_v3   ;;  %v296_v23 = vrot.slane %v233_v17, %v295_v16  ;;  %v330_v32 = vrot.slane %v233_v17, %v329_v24  ;;  %v326_v33 = vrot.slane %v233_v17, %v325_v26  ;;  %s907_s9 = smov 64   ;;  %s908_s10 = smov 42   ;;  %vm410_vm12 = vcmask 490816  }
  0x13   : > { %v268_v27 = vrot.slane %v258_v20, %v257_v13  ;;  %v272_v28 = vrot.slane %v262_v21, %v257_v13  ;;  %v302_v29 = vrot.slane %v292_v22, %v291_v15  ;;  %s909_s11 = smov 46   ;;  %s910_s12 = smov 50   ;;  %vm402_vm13 = vcmask 319648  }
  0x14   : > { %v306_v30 = vrot.slane %v296_v23, %v291_v15  ;;  %v340_v41 = vrot.slane %v330_v32, %v325_v26  ;;  %v999_v44 = vrot.slane %v326_v33, %v325_v26  ;;  %s911_s13 = smov 54   ;;  %s912_s14 = smov 58   ;;  %vm412_vm14 = vcmask 483648  }
  0x15   : > { %877 = vset.pattern.permute.xlu1 %v890_v1  ;;  %s913_s15 = smov 62   ;;  %s914_s16 = smov 66   ;;  %vm494_vm15 = vcmask 97280   ;;  %vm498_vm0 = vcmask 90112   ;;  %vm628_vm1 = vcmask 24576  }
  0x16   : > { %880 = vset.pattern.permute.xlu0 %v891_v2  ;;  %286 = vperm.xlu1 %877, %v226_v3   ;;  %s915_s17 = smov 70  }
  0x17   : > { %236 = vperm.xlu0 %880, %v227_v5  }
  0x1a   : > { %878 = vset.pattern.permute.xlu1 %v892_v4 }
  0x1b   : > { %241 = vperm.xlu0 %880, %v228_v6   ;;  %316 = vperm.xlu1 %878, %v225_v0  }
  0x1f   : > { %881 = vset.pattern.permute.xlu1 %v891_v2  ;;  %378 = vperm.xlu0 %880, %v231_v7  }
  0x20   : > { %368 = vperm.xlu1 %881, %v229_v8  }
  0x24   : > { %373 = vperm.xlu1 %881, %v230_v9  }
  0x28   : > { %383 = vperm.xlu1 %881, %v232_v10  }
  0x88   : > { %v247_v18 = vpop.permute.xlu1 %246  ;;  %v283_v19 = vpop.permute.xlu0 %282 }
  0x89   : > { %v273_v34 = vmul.f32 %v268_v27, %v247_v18  ;;  %v274_v35 = vmul.f32 %v272_v28, %v247_v18  ;;  %v307_v36 = vmul.f32 %v302_v29, %v283_v19  ;;  %v308_v37 = vmul.f32 %v306_v30, %v283_v19 }
  0x8c   : > { %v252_v25 = vpop.permute.xlu1 %251 }
  0x8d   : > { %v321_v31 = vpop.permute.xlu0 %320  ;;  %v275_v45 = vmul.f32 %v268_v27, %v252_v25  ;;  %v276_v46 = vmul.f32 %v272_v28, %v252_v25 }
  0x8e   : > { %v343_v56 = vmul.f32 %v999_v44, %v321_v31  ;;  %v344_v57 = vmul.f32 %v340_v41, %v321_v31 }
  0x91   : > { %v287_v38 = vpop.permute.xlu1 %286 }
  0x92   : > { %v237_v39 = vpop.permute.xlu0 %236  ;;  %v309_v49 = vmul.f32 %v302_v29, %v287_v38  ;;  %v310_v52 = vmul.f32 %v306_v30, %v287_v38 }
  0x93   : > { %v277_v42 = vadd.f32 %v273_v34, %v237_v39  ;;  %v278_v43 = vadd.f32 %v274_v35, %v237_v39 }
  0x95   : > { %v1001_v47 = vadd.f32 %v307_v36, %v277_v42  ;;  %v312_v48 = vadd.f32 %v308_v37, %v278_v43 }
  0x96   : > { %v242_v50 = vpop.permute.xlu0 %241  ;;  %v1004_v51 = vpop.permute.xlu1 %316 }
  0x97   : > { %v279_v53 = vadd.f32 %v275_v45, %v242_v50  ;;  %v280_v54 = vadd.f32 %v276_v46, %v242_v50  ;;  %v342_v55 = vmul.f32 %v340_v41, %v1004_v51  ;;  %v341_v6 = vmul.f32 %v999_v44, %v1004_v51 }
  0x99   : > { %v313_v58 = vadd.f32 %v309_v49, %v279_v53  ;;  %v314_v59 = vadd.f32 %v310_v52, %v280_v54  ;;  %v1013_v60 = vadd.f32 %v342_v55, %v312_v48  ;;  %v345_v7 = vadd.f32 %v341_v6, %v1001_v47 }
  0x9a   : > { %v379_v62 = vpop.permute.xlu0 %378 }
  0x9b   : > { %v1019_v63 = vadd.f32 %v343_v56, %v313_v58  ;;  %v1021_v0 = vadd.f32 %v344_v57, %v314_v59  ;;  %v1023_v1 = vpop.permute.xlu1 %368  ;;  %v353_v8 = vmul.f32 -4.36785, %v345_v7  ;;  %vm349_vm7 = vcmp.gt.f32.partialorder %v345_v7, 0.0 }
  0x9c   : > { %v1028_v2 = vsel %vm1015_vm4, %v1023_v1, %v379_v62  ;;  %389 = vst.msk [vmem:[%s1011_s20] sm:$0xff] %vm388_vm2, %v1023_v1  ;;  %v354_v14 = vmul.f32 -4.36785, %v1013_v60  ;;  %vm350_vm10 = vcmp.gt.f32.partialorder %v1013_v60, 0.0  ;;  %vm624_vm2 = vcmask 31744  }
  0x9d   : > { %757 = vst.msk [vmem:[%s1011_s20 + $0x18] sm:$0xff] %vm756_vm3, %v1023_v1  ;;  %394 = vrot.lane.b32.xlu1 %v1028_v2, %s893_s19  ;;  %v357_v9 = vsel %vm349_vm7, %v345_v7, %v353_v8  ;;  %v355_v10 = vmul.f32 -4.36785, %v1019_v63  ;;  %vm351_vm8 = vcmp.gt.f32.partialorder %v1019_v63, 0.0  ;;  %v356_v12 = vmul.f32 -4.36785, %v1021_v0 }
  0x9e   : > { %vm352_vm9 = vcmp.gt.f32.partialorder %v1021_v0, 0.0  ;;  %v358_v15 = vsel %vm350_vm10, %v1013_v60, %v354_v14  ;;  %vm422_vm3 = vcmask 474448   ;;  %vm424_vm7 = vcmask 467280  }
  0x9f   : > { %v1035_v3 = vpop.permute.xlu1 %373  ;;  %v359_v11 = vsel %vm351_vm8, %v1019_v63, %v355_v10  ;;  %v360_v13 = vsel %vm352_vm9, %v1021_v0, %v356_v12  ;;  %vm462_vm8 = vcmask 802448   ;;  %vm434_vm9 = vcmask 647648  }
  0xa0   : > { %391 = vst.msk [vmem:[%s1011_s20 + $0x20] sm:$0x1] %vm390_vm5, %v1035_v3  ;;  %vm442_vm5 = vcmask 638448   ;;  %vm472_vm10 = vcmask 982816  }
  0xa1   : > { %761 = vst.msk [vmem:[%s1011_s20 + $0x38] sm:$0x1] %vm760_vm6, %v1035_v3  ;;  %404 = vrot.lane.b32.xlu1 %v1028_v2, %s894_s21  ;;  %vm452_vm6 = vcmask 818816  }
  0xa3   : > { %v384_v4 = vpop.permute.xlu1 %383 }
  0xa4   : > { %v1045_v5 = vsel %vm1015_vm4, %v1035_v3, %v384_v4  ;;  %vm432_vm4 = vcmask 654816  }
  0xa5   : > { %426 = vrot.lane.b32.xlu1 %v1028_v2, %s895_s22  ;;  %396 = vrot.lane.b32.xlu0 %v1045_v5, %s893_s19  ;;  %s916_s19 = smov 82  }
  0xa9   : > { %446 = vrot.lane.b32.xlu1 %v1028_v2, %s896_s23  ;;  %406 = vrot.lane.b32.xlu0 %v1045_v5, %s894_s21  ;;  %s917_s21 = smov 86  }
  0xad   : > { %466 = vrot.lane.b32.xlu1 %v1028_v2, %s897_s24  ;;  %428 = vrot.lane.b32.xlu0 %v1045_v5, %s895_s22  ;;  %s918_s22 = smov 90  }
  0xb1   : > { %486 = vrot.lane.b32.xlu1 %v1028_v2, %s898_s25  ;;  %448 = vrot.lane.b32.xlu0 %v1045_v5, %s896_s23  ;;  %s919_s23 = smov 94  }
  0xb5   : > { %514 = vrot.lane.b32.xlu1 %v1028_v2, %s899_s26  ;;  %468 = vrot.lane.b32.xlu0 %v1045_v5, %s897_s24  ;;  %s920_s24 = smov 74  }
  0xb9   : > { %534 = vrot.lane.b32.xlu1 %v1028_v2, %s900_s27  ;;  %488 = vrot.lane.b32.xlu0 %v1045_v5, %s898_s25  ;;  %s921_s25 = smov 98  }
  0xbd   : > { %554 = vrot.lane.b32.xlu1 %v1028_v2, %s901_s28  ;;  %516 = vrot.lane.b32.xlu0 %v1045_v5, %s899_s26  ;;  %s922_s26 = smov 92  }
  0xc1   : > { %618 = vrot.lane.b32.xlu1 %v1045_v5, %s902_s29  ;;  %536 = vrot.lane.b32.xlu0 %v1045_v5, %s900_s27  ;;  %s923_s27 = smov 84  }
  0xc5   : > { %646 = vrot.lane.b32.xlu1 %v1045_v5, %s903_s30  ;;  %556 = vrot.lane.b32.xlu0 %v1045_v5, %s901_s28  ;;  %s924_s28 = smov 78  }
  0xc9   : > { %666 = vrot.lane.b32.xlu1 %v1045_v5, %s904_s6  ;;  %616 = vrot.lane.b32.xlu0 %v1028_v2, %s902_s29  ;;  %s925_s29 = smov 102  }
  0xcd   : > { %686 = vrot.lane.b32.xlu1 %v1045_v5, %s905_s7  ;;  %644 = vrot.lane.b32.xlu0 %v1028_v2, %s903_s30  ;;  %s926_s30 = smov 104  }
  0xd1   : > { %574 = vrot.lane.b32.xlu1 %v1028_v2, %s906_s8  ;;  %664 = vrot.lane.b32.xlu0 %v1028_v2, %s904_s6 }
  0xd5   : > { %704 = vrot.lane.b32.xlu1 %v1028_v2, %s907_s9  ;;  %684 = vrot.lane.b32.xlu0 %v1028_v2, %s905_s7 }
  0xd9   : > { %576 = vrot.lane.b32.xlu0 %v1045_v5, %s906_s8  ;;  %416 = vrot.lane.b32.xlu1 %v357_v9, %s908_s10 }
  0xdd   : > { %706 = vrot.lane.b32.xlu0 %v1045_v5, %s907_s9  ;;  %436 = vrot.lane.b32.xlu1 %v357_v9, %s909_s11 }
  0xe1   : > { %418 = vrot.lane.b32.xlu0 %v359_v11, %s908_s10  ;;  %456 = vrot.lane.b32.xlu1 %v357_v9, %s910_s12 }
  0xe5   : > { %438 = vrot.lane.b32.xlu0 %v359_v11, %s909_s11  ;;  %476 = vrot.lane.b32.xlu1 %v357_v9, %s911_s13 }
  0xe9   : > { %458 = vrot.lane.b32.xlu0 %v359_v11, %s910_s12  ;;  %500 = vrot.lane.b32.xlu1 %v357_v9, %s912_s14 }
  0xed   : > { %478 = vrot.lane.b32.xlu0 %v359_v11, %s911_s13  ;;  %524 = vrot.lane.b32.xlu1 %v357_v9, %s913_s15 }
  0xf1   : > { %502 = vrot.lane.b32.xlu0 %v359_v11, %s912_s14  ;;  %544 = vrot.lane.b32.xlu1 %v357_v9, %s914_s16 }
  0xf5   : > { %526 = vrot.lane.b32.xlu0 %v359_v11, %s913_s15  ;;  %564 = vrot.lane.b32.xlu1 %v357_v9, %s915_s17 }
  0xf9   : > { %546 = vrot.lane.b32.xlu0 %v359_v11, %s914_s16  ;;  %632 = vrot.lane.b32.xlu1 %v360_v13, %s916_s19 }
  0xfd   : > { %630 = vrot.lane.b32.xlu0 %v358_v15, %s916_s19  ;;  %656 = vrot.lane.b32.xlu1 %v360_v13, %s917_s21 }
 0x101   : > { %654 = vrot.lane.b32.xlu0 %v358_v15, %s917_s21  ;;  %676 = vrot.lane.b32.xlu1 %v360_v13, %s918_s22 }
 0x105   : > { %674 = vrot.lane.b32.xlu0 %v358_v15, %s918_s22  ;;  %694 = vrot.lane.b32.xlu1 %v358_v15, %s919_s23 }
 0x109   : > { %566 = vrot.lane.b32.xlu0 %v359_v11, %s915_s17  ;;  %586 = vrot.lane.b32.xlu1 %v358_v15, %s920_s24 }
 0x10d   : > { %696 = vrot.lane.b32.xlu0 %v360_v13, %s919_s23  ;;  %714 = vrot.lane.b32.xlu1 %v358_v15, %s921_s25 }
 0x10f   : > { %v395_v16 = vpop.permute.xlu1 %394 }
 0x110   : > { %401 = vst.msk [vmem:[%s1011_s20] sm:$0xff] %vm400_vm11, %v395_v16  ;;  %vm444_vm11 = vcmask 631280  }
 0x111   : > { %588 = vrot.lane.b32.xlu0 %v360_v13, %s920_s24  ;;  %596 = vrot.lane.b32.xlu1 %v1028_v2, %s922_s26 }
 0x113   : > { %v405_v17 = vpop.permute.xlu1 %404 }
 0x114   : > { %411 = vst.msk [vmem:[%s1011_s20] sm:$0xff] %vm410_vm12, %v405_v17  ;;  %vm482_vm12 = vcmask 966448  }
 0x115   : > { %716 = vrot.lane.b32.xlu0 %v360_v13, %s921_s25  ;;  %724 = vrot.lane.b32.xlu1 %v1028_v2, %s923_s27 }
 0x117   : > { %v397_v18 = vpop.permute.xlu0 %396  ;;  %v427_v19 = vpop.permute.xlu1 %426 }
 0x118   : > { %403 = vst.msk [vmem:[%s1011_s20 + $0x20] sm:$0x1] %vm402_vm13, %v397_v18  ;;  %vm454_vm13 = vcmask 811648  }
 0x119   : > { %598 = vrot.lane.b32.xlu0 %v1045_v5, %s922_s26  ;;  %606 = vrot.lane.b32.xlu1 %v358_v15, %s924_s28 }
 0x11b   : > { %v407_v20 = vpop.permute.xlu0 %406  ;;  %v447_v21 = vpop.permute.xlu1 %446 }
 0x11c   : > { %413 = vst.msk [vmem:[%s1011_s20 + $0x20] sm:$0x1] %vm412_vm14, %v407_v20  ;;  %vm492_vm14 = vcmask 1048512  }
 0x11d   : > { %726 = vrot.lane.b32.xlu0 %v1045_v5, %s923_s27  ;;  %734 = vrot.lane.b32.xlu1 %v358_v15, %s925_s29 }
 0x11f   : > { %v429_v22 = vpop.permute.xlu0 %428  ;;  %v467_v23 = vpop.permute.xlu1 %466 }
 0x121   : > { %608 = vrot.lane.b32.xlu0 %v360_v13, %s924_s28  ;;  %744 = vrot.lane.b32.xlu1 %v1028_v2, %s926_s30 }
 0x123   : > { %v449_v24 = vpop.permute.xlu0 %448  ;;  %v487_v25 = vpop.permute.xlu1 %486 }
 0x124   : > { %495 = vst.msk [vmem:[%s1011_s20 + $0x8] sm:$0xff] %vm494_vm15, %v487_v25  ;;  %vm464_vm15 = vcmask 795280  }
 0x125   : > { %736 = vrot.lane.b32.xlu0 %v360_v13, %s925_s29 }
 0x127   : > { %v1097_v26 = vpop.permute.xlu0 %468  ;;  %v1099_v27 = vpop.permute.xlu1 %514 }
 0x129   : > { %746 = vrot.lane.b32.xlu0 %v1045_v5, %s926_s30 }
 0x12b   : > { %v1102_v28 = vpop.permute.xlu0 %488  ;;  %v1104_v29 = vpop.permute.xlu1 %534 }
 0x12c   : > { %499 = vst.msk [vmem:[%s1011_s20 + $0x28] sm:$0x1] %vm498_vm0, %v1102_v28  ;;  %vm506_vm0 = vcmask 1048528  }
 0x12f   : > { %v1108_v30 = vpop.permute.xlu0 %516  ;;  %v1110_v31 = vpop.permute.xlu1 %554 }
 0x133   : > { %v1112_v32 = vpop.permute.xlu0 %536  ;;  %v1114_v33 = vpop.permute.xlu1 %618 }
 0x134   : > { %629 = vst.msk [vmem:[%s1011_s20 + $0x30] sm:$0x1] %vm628_vm1, %v1114_v33  ;;  %vm508_vm1 = vcmask 80896  }
 0x137   : > { %v1118_v34 = vpop.permute.xlu0 %556  ;;  %v1120_v35 = vpop.permute.xlu1 %646 }
 0x13b   : > { %v1122_v36 = vpop.permute.xlu0 %616  ;;  %v1124_v37 = vpop.permute.xlu1 %666 }
 0x13c   : > { %625 = vst.msk [vmem:[%s1011_s20 + $0x10] sm:$0xff] %vm624_vm2, %v1122_v36  ;;  %vm474_vm2 = vcmask 975648  }
 0x13f   : > { %v1128_v38 = vpop.permute.xlu0 %644  ;;  %v1130_v39 = vpop.permute.xlu1 %686 }
 0x143   : > { %v1132_v40 = vpop.permute.xlu0 %664  ;;  %v1134_v41 = vpop.permute.xlu1 %574 }
 0x147   : > { %v1136_v42 = vpop.permute.xlu0 %684  ;;  %v1138_v43 = vpop.permute.xlu1 %704 }
 0x14b   : > { %v1140_v44 = vpop.permute.xlu0 %576  ;;  %v417_v45 = vpop.permute.xlu1 %416 }
 0x14c   : > { %423 = vst.msk [vmem:[%s1011_s20] sm:$0xff] %vm422_vm3, %v417_v45  ;;  %vm520_vm3 = vcmask 261216  }
 0x14d   : > { %433 = vst.msk [vmem:[%s1011_s20] sm:$0xff] %vm432_vm4, %v427_v19  ;;  %vm484_vm4 = vcmask 959280  }
 0x14f   : > { %v1144_v46 = vpop.permute.xlu0 %706  ;;  %v437_v47 = vpop.permute.xlu1 %436 }
 0x150   : > { %443 = vst.msk [vmem:[%s1011_s20] sm:$0xff] %vm442_vm5, %v437_v47  ;;  %vm530_vm5 = vcmask 244848  }
 0x151   : > { %453 = vst.msk [vmem:[%s1011_s20] sm:$0xff] %vm452_vm6, %v447_v21  ;;  %vm496_vm6 = vcmask 1041344  }
 0x153   : > { %v419_v48 = vpop.permute.xlu0 %418  ;;  %v457_v49 = vpop.permute.xlu1 %456 }
 0x154   : > { %425 = vst.msk [vmem:[%s1011_s20 + $0x20] sm:$0x1] %vm424_vm7, %v419_v48  ;;  %vm540_vm7 = vcmask 425216  }
 0x155   : > { %463 = vst.msk [vmem:[%s1011_s20] sm:$0xff] %vm462_vm8, %v457_v49  ;;  %vm510_vm8 = vcmask 1041360  }
 0x156   : > { %435 = vst.msk [vmem:[%s1011_s20 + $0x20] sm:$0x1] %vm434_vm9, %v429_v22  ;;  %vm512_vm9 = vcmask 73728  }
 0x157   : > { %473 = vst.msk [vmem:[%s1011_s20] sm:$0xff] %vm472_vm10, %v467_v23  ;;  %v439_v50 = vpop.permute.xlu0 %438  ;;  %v477_v51 = vpop.permute.xlu1 %476  ;;  %vm550_vm10 = vcmask 408848  }
 0x158   : > { %445 = vst.msk [vmem:[%s1011_s20 + $0x20] sm:$0x1] %vm444_vm11, %v439_v50  ;;  %vm522_vm11 = vcmask 254048  }
 0x159   : > { %483 = vst.msk [vmem:[%s1011_s20] sm:$0xff] %vm482_vm12, %v477_v51  ;;  %vm560_vm12 = vcmask 589216  }
 0x15a   : > { %455 = vst.msk [vmem:[%s1011_s20 + $0x20] sm:$0x1] %vm454_vm13, %v449_v24  ;;  %vm532_vm13 = vcmask 237680  }
 0x15b   : > { %493 = vst.msk [vmem:[%s1011_s20] sm:$0xff] %vm492_vm14, %v487_v25  ;;  %v459_v52 = vpop.permute.xlu0 %458  ;;  %v501_v53 = vpop.permute.xlu1 %500  ;;  %vm570_vm14 = vcmask 572848  }
 0x15c   : > { %465 = vst.msk [vmem:[%s1011_s20 + $0x20] sm:$0x1] %vm464_vm15, %v459_v52  ;;  %vm542_vm15 = vcmask 418048  }
 0x15d   : > { %507 = vst.msk [vmem:[%s1011_s20] sm:$0xff] %vm506_vm0, %v501_v53  ;;  %vm580_vm0 = vcmask 753216  }
 0x15e   : > { %509 = vst.msk [vmem:[%s1011_s20 + $0x8] sm:$0xff] %vm508_vm1, %v501_v53  ;;  %vm552_vm1 = vcmask 401680  }
 0x15f   : > { %475 = vst.msk [vmem:[%s1011_s20 + $0x20] sm:$0x1] %vm474_vm2, %v1097_v26  ;;  %v479_v54 = vpop.permute.xlu0 %478  ;;  %v525_v55 = vpop.permute.xlu1 %524  ;;  %vm642_vm2 = vcmask 8192  }
 0x160   : > { %521 = vst.msk [vmem:[%s1011_s20 + $0x8] sm:$0xff] %vm520_vm3, %v1099_v27  ;;  %vm652_vm3 = vcmask 188448  }
 0x161   : > { %485 = vst.msk [vmem:[%s1011_s20 + $0x20] sm:$0x1] %vm484_vm4, %v479_v54  ;;  %vm562_vm4 = vcmask 582048  }
 0x162   : > { %531 = vst.msk [vmem:[%s1011_s20 + $0x8] sm:$0xff] %vm530_vm5, %v525_v55  ;;  %vm638_vm5 = vcmask 15360  }
 0x163   : > { %497 = vst.msk [vmem:[%s1011_s20 + $0x20] sm:$0x1] %vm496_vm6, %v1102_v28  ;;  %v503_v56 = vpop.permute.xlu0 %502  ;;  %v545_v57 = vpop.permute.xlu1 %544  ;;  %vm662_vm6 = vcmask 172080  }
 0x164   : > { %541 = vst.msk [vmem:[%s1011_s20 + $0x8] sm:$0xff] %vm540_vm7, %v1104_v29  ;;  %vm650_vm7 = vcmask 195616  }
 0x165   : > { %511 = vst.msk [vmem:[%s1011_s20 + $0x20] sm:$0x1] %vm510_vm8, %v503_v56  ;;  %vm672_vm8 = vcmask 352448  }
 0x166   : > { %513 = vst.msk [vmem:[%s1011_s20 + $0x28] sm:$0x1] %vm512_vm9, %v503_v56  ;;  %vm660_vm9 = vcmask 179248  }
 0x167   : > { %551 = vst.msk [vmem:[%s1011_s20 + $0x8] sm:$0xff] %vm550_vm10, %v545_v57  ;;  %v527_v58 = vpop.permute.xlu0 %526  ;;  %v565_v59 = vpop.permute.xlu1 %564  ;;  %vm682_vm10 = vcmask 336080  }
 0x168   : > { %523 = vst.msk [vmem:[%s1011_s20 + $0x28] sm:$0x1] %vm522_vm11, %v1108_v30  ;;  %vm670_vm11 = vcmask 359616  }
 0x169   : > { %561 = vst.msk [vmem:[%s1011_s20 + $0x8] sm:$0xff] %vm560_vm12, %v1110_v31  ;;  %vm692_vm12 = vcmask 516448  }
 0x16a   : > { %533 = vst.msk [vmem:[%s1011_s20 + $0x28] sm:$0x1] %vm532_vm13, %v527_v58  ;;  %vm680_vm13 = vcmask 343248  }
 0x16b   : > { %571 = vst.msk [vmem:[%s1011_s20 + $0x8] sm:$0xff] %vm570_vm14, %v565_v59  ;;  %v547_v60 = vpop.permute.xlu0 %546  ;;  %v1182_v61 = vpop.permute.xlu1 %632  ;;  %vm690_vm14 = vcmask 523616  }
 0x16c   : > { %543 = vst.msk [vmem:[%s1011_s20 + $0x28] sm:$0x1] %vm542_vm15, %v1112_v32  ;;  %vm700_vm15 = vcmask 507248  }
 0x16d   : > { %581 = vst.msk [vmem:[%s1011_s20 + $0x8] sm:$0xff] %vm580_vm0, %v1134_v41  ;;  %vm710_vm0 = vcmask 687616  }
 0x16e   : > { %553 = vst.msk [vmem:[%s1011_s20 + $0x28] sm:$0x1] %vm552_vm1, %v547_v60  ;;  %vm572_vm1 = vcmask 565680  }
 0x16f   : > { %643 = vst.msk [vmem:[%s1011_s20 + $0x30] sm:$0x1] %vm642_vm2, %v1182_v61  ;;  %v1191_v62 = vpop.permute.xlu0 %630  ;;  %v657_v63 = vpop.permute.xlu1 %656  ;;  %vm592_vm2 = vcmask 736848  }
 0x170   : > { %653 = vst.msk [vmem:[%s1011_s20 + $0x30] sm:$0x1] %vm652_vm3, %v1120_v35  ;;  %vm582_vm3 = vcmask 746048  }
 0x171   : > { %563 = vst.msk [vmem:[%s1011_s20 + $0x28] sm:$0x1] %vm562_vm4, %v1118_v34  ;;  %vm702_vm4 = vcmask 500080  }
 0x172   : > { %639 = vst.msk [vmem:[%s1011_s20 + $0x10] sm:$0xff] %vm638_vm5, %v1191_v62  ;;  %vm720_vm5 = vcmask 671248  }
 0x173   : > { %663 = vst.msk [vmem:[%s1011_s20 + $0x30] sm:$0x1] %vm662_vm6, %v657_v63  ;;  %v655_v0 = vpop.permute.xlu0 %654  ;;  %v677_v2 = vpop.permute.xlu1 %676  ;;  %vm712_vm6 = vcmask 680448  }
 0x174   : > { %651 = vst.msk [vmem:[%s1011_s20 + $0x10] sm:$0xff] %vm650_vm7, %v1128_v38  ;;  %vm594_vm7 = vcmask 729680  }
 0x175   : > { %673 = vst.msk [vmem:[%s1011_s20 + $0x30] sm:$0x1] %vm672_vm8, %v1124_v37  ;;  %vm602_vm8 = vcmask 917216  }
 0x176   : > { %661 = vst.msk [vmem:[%s1011_s20 + $0x10] sm:$0xff] %vm660_vm9, %v655_v0  ;;  %vm722_vm9 = vcmask 664080  }
 0x177   : > { %683 = vst.msk [vmem:[%s1011_s20 + $0x30] sm:$0x1] %vm682_vm10, %v677_v2  ;;  %v675_v4 = vpop.permute.xlu0 %674  ;;  %v695_v5 = vpop.permute.xlu1 %694  ;;  %vm730_vm10 = vcmask 851616  }
 0x178   : > { %671 = vst.msk [vmem:[%s1011_s20 + $0x10] sm:$0xff] %vm670_vm11, %v1132_v40  ;;  %vm604_vm11 = vcmask 910048  }
 0x179   : > { %693 = vst.msk [vmem:[%s1011_s20 + $0x30] sm:$0x1] %vm692_vm12, %v1130_v39  ;;  %vm612_vm12 = vcmask 900848  }
 0x17a   : > { %681 = vst.msk [vmem:[%s1011_s20 + $0x10] sm:$0xff] %vm680_vm13, %v675_v4  ;;  %vm622_vm13 = vcmask 1048448  }
 0x17b   : > { %691 = vst.msk [vmem:[%s1011_s20 + $0x10] sm:$0xff] %vm690_vm14, %v1136_v42  ;;  %v567_v6 = vpop.permute.xlu0 %566  ;;  %v587_v7 = vpop.permute.xlu1 %586  ;;  %vm636_vm14 = vcmask 1048464  }
 0x17c   : > { %701 = vst.msk [vmem:[%s1011_s20 + $0x10] sm:$0xff] %vm700_vm15, %v695_v5  ;;  %vm732_vm15 = vcmask 844448  }
 0x17d   : > { %711 = vst.msk [vmem:[%s1011_s20 + $0x10] sm:$0xff] %vm710_vm0, %v1138_v43  ;;  %vm740_vm0 = vcmask 835248  }
 0x17e   : > { %573 = vst.msk [vmem:[%s1011_s20 + $0x28] sm:$0x1] %vm572_vm1, %v567_v6  ;;  %vm614_vm1 = vcmask 893680  }
 0x17f   : > { %593 = vst.msk [vmem:[%s1011_s20 + $0x8] sm:$0xff] %vm592_vm2, %v587_v7  ;;  %v697_v8 = vpop.permute.xlu0 %696  ;;  %v715_v9 = vpop.permute.xlu1 %714  ;;  %vm750_vm2 = vcmask 1015616  }
 0x180   : > { %583 = vst.msk [vmem:[%s1011_s20 + $0x28] sm:$0x1] %vm582_vm3, %v1140_v44  ;;  %vm626_vm3 = vcmask 1041280  }
 0x181   : > { %703 = vst.msk [vmem:[%s1011_s20 + $0x30] sm:$0x1] %vm702_vm4, %v697_v8  ;;  %vm754_vm4 = vcmask 1048544  }
 0x182   : > { %721 = vst.msk [vmem:[%s1011_s20 + $0x10] sm:$0xff] %vm720_vm5, %v715_v9  ;;  %vm640_vm5 = vcmask 1041296  }
 0x183   : > { %713 = vst.msk [vmem:[%s1011_s20 + $0x30] sm:$0x1] %vm712_vm6, %v1144_v46  ;;  %v589_v10 = vpop.permute.xlu0 %588  ;;  %v597_v11 = vpop.permute.xlu1 %596  ;;  %vm742_vm6 = vcmask 828080  }
 0x184   : > { %595 = vst.msk [vmem:[%s1011_s20 + $0x28] sm:$0x1] %vm594_vm7, %v589_v10  ;;  %vm752_vm7 = vcmask 1008448  }
 0x185   : > { %603 = vst.msk [vmem:[%s1011_s20 + $0x8] sm:$0xff] %vm602_vm8, %v597_v11  ;;  %vm758_vm8 = vcmask 1041376  }
 0x187   : > { %v717_v12 = vpop.permute.xlu0 %716  ;;  %v725_v13 = vpop.permute.xlu1 %724 }
 0x188   : > { %723 = vst.msk [vmem:[%s1011_s20 + $0x30] sm:$0x1] %vm722_vm9, %v717_v12 }
 0x189   : > { %731 = vst.msk [vmem:[%s1011_s20 + $0x10] sm:$0xff] %vm730_vm10, %v725_v13 }
 0x18b   : > { %v599_v14 = vpop.permute.xlu0 %598  ;;  %v607_v15 = vpop.permute.xlu1 %606 }
 0x18c   : > { %605 = vst.msk [vmem:[%s1011_s20 + $0x28] sm:$0x1] %vm604_vm11, %v599_v14 }
 0x18d   : > { %613 = vst.msk [vmem:[%s1011_s20 + $0x8] sm:$0xff] %vm612_vm12, %v607_v15 }
 0x18e   : > { %623 = vst.msk [vmem:[%s1011_s20 + $0x8] sm:$0xff] %vm622_vm13, %v1122_v36 }
 0x18f   : > { %637 = vst.msk [vmem:[%s1011_s20 + $0x8] sm:$0xff] %vm636_vm14, %v1191_v62  ;;  %v727_v16 = vpop.permute.xlu0 %726  ;;  %v735_v17 = vpop.permute.xlu1 %734 }
 0x190   : > { %733 = vst.msk [vmem:[%s1011_s20 + $0x30] sm:$0x1] %vm732_vm15, %v727_v16 }
 0x191   : > { %741 = vst.msk [vmem:[%s1011_s20 + $0x10] sm:$0xff] %vm740_vm0, %v735_v17 }
 0x193   : > { %v609_v18 = vpop.permute.xlu0 %608  ;;  %v745_v19 = vpop.permute.xlu1 %744 }
 0x194   : > { %615 = vst.msk [vmem:[%s1011_s20 + $0x28] sm:$0x1] %vm614_vm1, %v609_v18 }
 0x195   : > { %751 = vst.msk [vmem:[%s1011_s20 + $0x10] sm:$0xff] %vm750_vm2, %v745_v19 }
 0x196   : > { %627 = vst.msk [vmem:[%s1011_s20 + $0x28] sm:$0x1] %vm626_vm3, %v1114_v33 }
 0x197   : > { %755 = vst.msk [vmem:[%s1011_s20 + $0x10] sm:$0xff] %vm754_vm4, %v1023_v1  ;;  %v737_v20 = vpop.permute.xlu0 %736 }
 0x198   : > { %641 = vst.msk [vmem:[%s1011_s20 + $0x28] sm:$0x1] %vm640_vm5, %v1182_v61 }
 0x199   : > { %743 = vst.msk [vmem:[%s1011_s20 + $0x30] sm:$0x1] %vm742_vm6, %v737_v20 }
 0x19b   : > { %v747_v21 = vpop.permute.xlu0 %746 }
 0x19c   : > { %753 = vst.msk [vmem:[%s1011_s20 + $0x30] sm:$0x1] %vm752_vm7, %v747_v21 }
 0x19d   : > { %759 = vst.msk [vmem:[%s1011_s20 + $0x30] sm:$0x1] %vm758_vm8, %v1035_v3 }
 0x19e PF: > { %s15_s18 = sadd.s32 1, %s888_s18  }
 0x19f   : > { %p12_p4 = scmp.ge.s32.totalorder %s15_s18, 4  }
 0x1a1   :  { %14 = sbr.rel (!%p12_p4) target bundleno = 1 (0x1), region = 70 }

</bundles_post_ra>
